<compile_context>
chip_gen: v5e
topology: v5e:2x2
jax: 0.10.0
libtpu: 0.0.40
codegen_flags: <defaults>
</compile_context>

<pallas_src>
import functools

import jax
import jax.numpy as jnp
from jax import lax
from jax.experimental import pallas as pl
from jax.experimental.pallas import tpu as pltpu


def _round_up(x, m):
    return ((x + m - 1) // m) * m


def _multihot_matmul_kernel(idx_ref, emb_ref, out_ref, *, num_labels):
    """idx_ref: (tile_n, L) int32 in VMEM; emb_ref: (tile_v, d_pad) table tile;
    out_ref: (tile_n, d_pad) f32 block, revisited/accumulated across the vocab axis."""
    v_blk = pl.program_id(1)
    tile_n = out_ref.shape[0]
    tile_v = emb_ref.shape[0]

    ids = idx_ref[...]                                               # (tile_n, L)
    col = lax.broadcasted_iota(jnp.int32, (tile_n, tile_v), 1) + v_blk * tile_v

    # Multi-hot counts on the VPU: L static compares, no per-row scalar work,
    # no clip (out-of-range ids match nothing).
    counts = (ids[:, 0:1] == col).astype(jnp.float32)
    for lbl in range(1, num_labels):                                 # L small & static
        counts = counts + (ids[:, lbl:lbl + 1] == col).astype(jnp.float32)

    # One MXU matmul per grid step; f32 accumulation into the resident block.
    partial = jnp.dot(counts.astype(emb_ref.dtype), emb_ref[...],
                      preferred_element_type=jnp.float32)

    @pl.when(v_blk == 0)
    def _():
        out_ref[...] = partial

    @pl.when(v_blk > 0)
    def _():
        out_ref[...] = out_ref[...] + partial

    # TODO(synk): training-mode F.dropout (stochastic torch RNG) is not
    # implemented; eval-mode (identity) is.  A pltpu.prng_seed /
    # prng_random_bits mask on out_ref would add it.


@functools.partial(jax.jit, static_argnames=("tile_n", "table_rows_per_tile"))
def multilabel_embedding(indices, table, *, tile_n=None, table_rows_per_tile=None):
    """indices: (B, S, L) int ids (padded with padding_idx=0); table: (V, D).

    Returns (B, S, D) = sum over the label axis of table[indices] (dropout = eval).
    """
    b, s, num_labels = indices.shape
    v, d = table.shape
    n = b * s
    elem_bytes = jnp.dtype(table.dtype).itemsize

    d_pad = _round_up(d, 128)                     # lane-dense table / output

    # --- VMEM budgeting: 24 MiB working set under a 32 MiB scoped limit
    # (v5e default 16 MiB is raised; v6e/v7x default 32 MiB is respected).
    budget = 24 * 1024 * 1024

    # Vocab tile: keep the (conservatively double-buffered) table tile within
    # half the budget.  For small V this is the whole table -> constant block
    # index -> DMA'd once and resident across the row grid.
    tv = min(_round_up(v, 8),
             _round_up(table_rows_per_tile, 8) if table_rows_per_tile else 1024)
    while 2 * tv * d_pad * elem_bytes > budget // 2 and tv > 8:
        tv = max(8, _round_up(tv // 2, 8))
    v_pad = _round_up(v, tv)
    num_v_tiles = v_pad // tv
    # TODO(synk): for very large vocabularies a dynamic-gather kernel (fetching
    # only the L referenced rows per position) would avoid streaming the whole
    # table once per row tile; for label vocabularies num_v_tiles is 1.

    # Row tile: biggest tile that fits the remaining budget (out + idx blocks
    # double-buffered + counts/compare temporaries), but split into >= 2
    # roughly even tiles so the "parallel" axis feeds both v7x TensorCores.
    rem = budget - 2 * tv * d_pad * elem_bytes
    per_row = 2 * (d_pad * 4 + num_labels * 4) + 2 * tv * 4
    tn_cap = max(8, min(int(tile_n) if tile_n else 1024, (rem // per_row) // 8 * 8))
    target_tiles = max(2, pl.cdiv(n, tn_cap))
    tn = max(8, min(tn_cap, _round_up(pl.cdiv(n, target_tiles), 8)))
    n_pad = _round_up(n, tn)
    num_row_tiles = n_pad // tn

    # Layout prep (in a real module the padded table is prepared once at init;
    # skipped entirely when already aligned).
    if d_pad != d or v_pad != v:
        table = jnp.pad(table, ((0, v_pad - v), (0, d_pad - d)))
    idx = indices.reshape(n, num_labels).astype(jnp.int32)
    if n_pad != n:
        idx = jnp.pad(idx, ((0, n_pad - n), (0, 0)))   # pad rows are sliced off below

    table_hbm_bytes = v_pad * d_pad * elem_bytes * (num_row_tiles if num_v_tiles > 1 else 1)
    cost = pl.CostEstimate(
        flops=2 * n_pad * v_pad * d_pad,
        transcendentals=0,
        bytes_accessed=int(idx.size) * 4 + int(table_hbm_bytes) + n_pad * d_pad * 4,
    )

    kernel = functools.partial(_multihot_matmul_kernel, num_labels=num_labels)

    out = pl.pallas_call(
        kernel,
        out_shape=jax.ShapeDtypeStruct((n_pad, d_pad), jnp.float32),
        grid=(num_row_tiles, num_v_tiles),                 # reduction (vocab) axis last
        in_specs=[
            pl.BlockSpec((tn, num_labels), lambda i, vb: (i, 0)),   # ids, per-tile VMEM
            pl.BlockSpec((tv, d_pad), lambda i, vb: (vb, 0)),       # table tile
        ],
        out_specs=pl.BlockSpec((tn, d_pad), lambda i, vb: (i, 0)),
        compiler_params=pltpu.CompilerParams(
            dimension_semantics=("parallel", "arbitrary"),
            vmem_limit_bytes=32 * 1024 * 1024,
        ),
        cost_estimate=cost,
    )(idx, table)

    return out[:n, :d].astype(table.dtype).reshape(b, s, d)


if __name__ == "__main__":
    key = jax.random.PRNGKey(0)
    k1, k2, k3, k4 = jax.random.split(key, 4)

    def reference(indices, table):
        return table[indices].sum(axis=2)      # gather + label-sum (dropout = identity)

    PAD = 0

    # --- Test 1: small vocab -> single resident table tile, 2-tile parallel row grid.
    B, S, L = 2, 8, 3
    V, D = 32, 32
    # Table values made bf16-representable so the check is independent of the
    # MXU's f32 pass configuration (row 0 zeroed like nn.Embedding padding_idx).
    table = jax.random.normal(k1, (V, D), dtype=jnp.float32)
    table = table.astype(jnp.bfloat16).astype(jnp.float32).at[PAD].set(0.0)
    idx = jax.random.randint(k2, (B, S, L), 0, V, dtype=jnp.int32)
    idx = idx.at[:, :, L - 1].set(
        jnp.where(idx[:, :, L - 1] % 2 == 0, PAD, idx[:, :, L - 1]))

    out = jax.block_until_ready(multilabel_embedding(idx, table))
    assert out.shape == (B, S, D)
    assert jnp.allclose(out, reference(idx, table), atol=1e-5, rtol=1e-5)

    # --- Test 2: larger vocab forced onto multiple vocab tiles (accumulation path).
    B2, S2, L2 = 3, 5, 4
    V2, D2 = 300, 48
    table2 = jax.random.normal(k3, (V2, D2), dtype=jnp.float32)
    table2 = table2.astype(jnp.bfloat16).astype(jnp.float32).at[PAD].set(0.0)
    idx2 = jax.random.randint(k4, (B2, S2, L2), 0, V2, dtype=jnp.int32)

    out2 = jax.block_until_ready(
        multilabel_embedding(idx2, table2, table_rows_per_tile=128))
    assert out2.shape == (B2, S2, D2)
    assert jnp.allclose(out2, reference(idx2, table2), atol=1e-5, rtol=1e-5)

    print("KERNEL_OK")
</pallas_src>

<mosaic_0001>
module attributes {stable_mosaic.version = 11 : i64} {
  func.func @_multihot_matmul_kernel(%arg0: i32, %arg1: i32, %arg2: memref<8x3xi32, #tpu.memory_space<vmem>>, %arg3: memref<32x128xf32, #tpu.memory_space<vmem>>, %arg4: memref<8x128xf32, #tpu.memory_space<vmem>>) attributes {dimension_semantics = [#tpu.dimension_semantics<parallel>, #tpu.dimension_semantics<arbitrary>], iteration_bounds = array<i64: 2, 1>, scalar_prefetch = 0 : i64, scratch_operands = 0 : i64, tpu.core_type = #tpu.core_type<tc>, window_params = [{transform_indices = @transform_0, window_bounds = array<i64: 8, 3>}, {transform_indices = @transform_1, window_bounds = array<i64: 32, 128>}, {transform_indices = @transform_2, window_bounds = array<i64: 8, 128>}]} {
    %c0 = arith.constant 0 : index
    %c0_0 = arith.constant 0 : index
    %0 = vector.load %arg2[%c0, %c0_0] : memref<8x3xi32, #tpu.memory_space<vmem>>, vector<8x3xi32>
    %1 = tpu.iota {dimensions = array<i32: 1>} : vector<8x32xi32>
    %c32_i32 = arith.constant 32 : i32
    %2 = arith.muli %arg1, %c32_i32 : i32
    %3 = vector.broadcast %2 : i32 to vector<8x32xi32>
    %4 = arith.addi %1, %3 : vector<8x32xi32>
    %5 = vector.extract_strided_slice %0 {offsets = [0, 0], sizes = [8, 1], strides = [1, 1]} : vector<8x3xi32> to vector<8x1xi32>
    %6 = vector.broadcast %5 : vector<8x1xi32> to vector<8x32xi32>
    %7 = arith.cmpi eq, %6, %4 : vector<8x32xi32>
    %8 = arith.extui %7 : vector<8x32xi1> to vector<8x32xi32>
    %9 = arith.sitofp %8 : vector<8x32xi32> to vector<8x32xf32>
    %10 = vector.extract_strided_slice %0 {offsets = [0, 1], sizes = [8, 1], strides = [1, 1]} : vector<8x3xi32> to vector<8x1xi32>
    %11 = vector.broadcast %10 : vector<8x1xi32> to vector<8x32xi32>
    %12 = arith.cmpi eq, %11, %4 : vector<8x32xi32>
    %13 = arith.extui %12 : vector<8x32xi1> to vector<8x32xi32>
    %14 = arith.sitofp %13 : vector<8x32xi32> to vector<8x32xf32>
    %15 = arith.addf %9, %14 : vector<8x32xf32>
    %16 = vector.extract_strided_slice %0 {offsets = [0, 2], sizes = [8, 1], strides = [1, 1]} : vector<8x3xi32> to vector<8x1xi32>
    %17 = vector.broadcast %16 : vector<8x1xi32> to vector<8x32xi32>
    %18 = arith.cmpi eq, %17, %4 : vector<8x32xi32>
    %19 = arith.extui %18 : vector<8x32xi1> to vector<8x32xi32>
    %20 = arith.sitofp %19 : vector<8x32xi32> to vector<8x32xf32>
    %21 = arith.addf %15, %20 : vector<8x32xf32>
    %c0_1 = arith.constant 0 : index
    %c0_2 = arith.constant 0 : index
    %22 = vector.load %arg3[%c0_1, %c0_2] : memref<32x128xf32, #tpu.memory_space<vmem>>, vector<32x128xf32>
    %cst = arith.constant dense<0.000000e+00> : vector<8x128xf32>
    %23 = tpu.matmul %21, %22, %cst {dimension_numbers = #tpu.dot_dimension_numbers<[1], [0], [0], [1], [0, 0, 1, 1], [], []>} : vector<8x32xf32>, vector<32x128xf32>, vector<8x128xf32> -> vector<8x128xf32>
    %c0_i32 = arith.constant 0 : i32
    %24 = arith.cmpi eq, %arg1, %c0_i32 : i32
    %25 = arith.extui %24 : i1 to i32
    %c0_i32_3 = arith.constant 0 : i32
    %26 = arith.cmpi ne, %25, %c0_i32_3 : i32
    scf.if %26 {
      %c0_6 = arith.constant 0 : index
      %c0_7 = arith.constant 0 : index
      %30 = vector.load %arg4[%c0_6, %c0_7] : memref<8x128xf32, #tpu.memory_space<vmem>>, vector<8x128xf32>
      tpu.vector_store %arg4[%c0_6, %c0_7], %23 {strides = array<i32>} : memref<8x128xf32, #tpu.memory_space<vmem>>, vector<8x128xf32>,
    } else {
    }
    %c0_i32_4 = arith.constant 0 : i32
    %27 = arith.cmpi sgt, %arg1, %c0_i32_4 : i32
    %28 = arith.extui %27 : i1 to i32
    %c0_i32_5 = arith.constant 0 : i32
    %29 = arith.cmpi ne, %28, %c0_i32_5 : i32
    scf.if %29 {
      %c0_6 = arith.constant 0 : index
      %c0_7 = arith.constant 0 : index
      %30 = vector.load %arg4[%c0_6, %c0_7] : memref<8x128xf32, #tpu.memory_space<vmem>>, vector<8x128xf32>
      %31 = arith.addf %30, %23 : vector<8x128xf32>
      %c0_8 = arith.constant 0 : index
      %c0_9 = arith.constant 0 : index
      %32 = vector.load %arg4[%c0_8, %c0_9] : memref<8x128xf32, #tpu.memory_space<vmem>>, vector<8x128xf32>
      tpu.vector_store %arg4[%c0_8, %c0_9], %31 {strides = array<i32>} : memref<8x128xf32, #tpu.memory_space<vmem>>, vector<8x128xf32>,
    } else {
    }
    return
  }
  func.func @transform_0(%arg0: i32, %arg1: i32) -> (i32, i32) {
    %c0_i32 = arith.constant 0 : i32
    %c0_i32_0 = arith.constant 0 : i32
    return %arg0, %c0_i32 : i32, i32
  }
  func.func @transform_1(%arg0: i32, %arg1: i32) -> (i32, i32) {
    %c0_i32 = arith.constant 0 : i32
    %c0_i32_0 = arith.constant 0 : i32
    return %arg1, %c0_i32 : i32, i32
  }
  func.func @transform_2(%arg0: i32, %arg1: i32) -> (i32, i32) {
    %c0_i32 = arith.constant 0 : i32
    %c0_i32_0 = arith.constant 0 : i32
    return %arg0, %c0_i32 : i32, i32
  }
}

</mosaic_0001>

<bundles_post_ra>
// kernel: multilabel_embedding.1
= control target key start
LH: loop header
LB: loop body
LE: loop exit
PB: predicated region body
PF: predicated region fallthrough
CT: control target
= control target key end

     0   :  { %s405_s9 = smov 0   ;;  %s407_s10 = smov 0   ;;  %s457_s0 = inlined_call_operand.vmem [shape: s32[16,3], index: 0, kind: input, shape index: {}]   ;;  %s458_s1 = inlined_call_operand.vmem [shape: f32[32,128], index: 1, kind: input, shape index: {}]   ;;  %s459_s2 = inlined_call_operand.vmem [shape: f32[16,128], index: 2, kind: output, shape index: {}]  }
   0x1   :  { %s409_s11 = smov 0  }
   0x2 LB: > { %s24_s12 = sadd.s32 1, %s380_s10  ;;  %p321_p0 = scmp.ge.s32.totalorder %s384_s11, 1  ;;  %s384_s11 = sphi %s409_s11, %s12_s11   ;;  %s380_s10 = sphi %s407_s10, %s461_s10   ;;  %s376_s9 = sphi %s405_s9, %s460_s9  }
   0x3   : > { %p26_p1 = scmp.ge.s32.totalorder %s24_s12, 2  ;;  %p134_p2 = scmp.lt.s32.totalorder %s384_s11, 3 }
   0x5   : > { %s463_s12 = smov (%p26_p1, %s24_s12), 0  ;;  %p135_p3 = pnand %p321_p0, %p134_p2 }
   0x6   : > { %p159_p4 = scmp.lt.s32.totalorder (!%p135_p3), %s376_s9, 1 }
   0x7   : > { %138 = sbr.rel (%p135_p3) target bundleno = 273 (0x111), region = 28 }
   0xc   : > { %v386_v0 = vmov 0   ;;  %v387_v1 = vmov 2   ;;  %s465_s9 = smov (!%p159_p4, %s376_s9), 1  ;;  %v388_v3 = vmov 1   ;;  %v202_v4 = vld [vmem:[%s458_s1 + $0x18] sm:$0xff]  ;;  %v201_v5 = vld [vmem:[%s458_s1 + $0x10] sm:$0xff]  ;;  %v174_v8 = vlaneseq }
   0xd   : > { %358 = vset.pattern.permute.xlu0 %v386_v0  ;;  %360 = vset.pattern.permute.xlu1 %v387_v1  ;;  %s322_s13 = sshll.u32 %s465_s9, 3  ;;  %v200_v6 = vld [vmem:[%s458_s1 + $0x8] sm:$0xff]  ;;  %v199_v7 = vld [vmem:[%s458_s1] sm:$0xff]  ;;  %v389_v13 = vmov 0.0   ;;  %vm203_vm3 = vcmask 261120  }
   0xe   : > { %s162_s16 = scalar_lea.vmem %s457_s0, %s322_s13  ;;  %219 = vmatpush.msra.mxu0 %v202_v4  ;;  %v175_v10 = vand.u32 127, %v174_v8  ;;  %s172_s27 = scalar_lea.vmem %s459_s2, %s322_s13 }
   0xf   : > { %v173_v2 = vld [vmem:[%s162_s16] sm:$0xff] }
  0x10   : > { %180 = vperm.xlu0 %358, %v173_v2   ;;  %193 = vperm.xlu1 %360, %v173_v2  }
  0x11   : > { %220 = vmatpush.msra.mxu0 %v201_v5 }
  0x13   : > { %221 = vmatpush.msra.mxu0 %v200_v6 }
  0x15   : > { %222 = vmatpush.msra.mxu0 %v199_v7 }
  0x18   : > { %359 = vset.pattern.permute.xlu0 %v388_v3 }
  0x19   : > { %186 = vperm.xlu0 %359, %v173_v2  }
  0x21   : > { %361 = vset.pattern.permute.xlu0 %v387_v1 }
  0x82   : > { %v181_v9 = vpop.permute.xlu0 %180  ;;  %v194_v11 = vpop.permute.xlu1 %193 }
  0x83   : > { %vm182_vm0 = vcmp.eq.s32.totalorder %v181_v9, %v175_v10  ;;  %vm195_vm1 = vcmp.eq.s32.totalorder %v194_v11, %v175_v10 }
  0x84   : > { %v324_v14 = vsel %vm182_vm0, 1.0, %v389_v13  ;;  %v326_v16 = vsel %vm195_vm1, 1.0, %v389_v13 }
  0x8b   : > { %v187_v12 = vpop.permute.xlu0 %186 }
  0x8c   : > { %vm188_vm2 = vcmp.eq.s32.totalorder %v187_v12, %v175_v10 }
  0x8d   : > { %v325_v15 = vsel %vm188_vm2, 1.0, %v389_v13 }
  0x8e   : > { %v191_v17 = vadd.f32 %v325_v15, %v324_v14 }
  0x90   : > { %v198_v18 = vadd.f32 %v326_v16, %v191_v17 }
  0x92   : > { %327 = vmatmul.msk.f32.vlgmr.msra.gmra.mxu0 %vm203_vm3, %v198_v18 }
 0x10f   : > { %v224_v19 = vpop.f32.mrf.mxu0 }
 0x110   : > { %231 = vst [vmem:[%s172_s27] sm:$0xff] %v224_v19 }
 0x111 PF: > { %s12_s11 = sadd.s32 1, %s384_s11   ;;  %s460_s9 = smov %s380_s10 }
 0x112   : > { %p9_p5 = scmp.ge.s32.totalorder %s12_s11, 4   ;;  %s461_s10 = smov %s463_s12 }
 0x114   :  { %11 = sbr.rel (!%p9_p5) target bundleno = 2 (0x2), region = 69 }

</bundles_post_ra>
